<compile_context>
chip_gen: v7x
topology: tpu7x:2x2x1
jax: 0.10.0
libtpu: 0.0.40
codegen_flags: <defaults>
</compile_context>

<pallas_src>
import jax
import jax.numpy as jnp
from jax import lax
from jax.experimental import pallas as pl
from jax.experimental.pallas import tpu as pltpu

EPS = 1e-5


def _mlp_kernel(x_ref, w1_ref, b1_ref, w2_ref, b2_ref, w3_ref, b3_ref, out_ref):
    # x_ref : (TB, 11) f32  -- one batch tile, batch-major (as stored in HBM)
    # w1    : (64, 11) bf16, b1: (64, 1) f32
    # w2    : (64, 64) bf16 (BN1 folded in), b2: (64, 1) f32
    # w3    : (1, 64)  bf16 (BN2 folded in), b3: (1, 1)  f32
    # out   : (1, TB)  f32  -- lane-dense logits slab
    w1 = w1_ref[...]
    b1 = b1_ref[...]
    w2 = w2_ref[...]
    b2 = b2_ref[...]
    w3 = w3_ref[...]
    b3 = b3_ref[...]

    tb = x_ref.shape[0]
    # Chunk the batch tile so per-chunk intermediates (64 x ck) stay in vregs /
    # small scratch rather than materializing (64, TB) f32 in VMEM.
    ck = next(c for c in (512, 256, 128) if tb % c == 0)

    for c in range(tb // ck):           # static trip count -> fully unrolled
        lo, hi = c * ck, (c + 1) * ck
        xc = x_ref[lo:hi, :].astype(jnp.bfloat16)            # (ck, 11)

        # h1[f, b] = sum_k w1[f, k] * xc[b, k]  ->  (64, ck), feature-major.
        # (transposed-RHS contraction; same pattern as q @ k^T in attention)
        h1 = lax.dot_general(w1, xc,
                             dimension_numbers=(((1,), (1,)), ((), ())),
                             preferred_element_type=jnp.float32)
        h1 = jnp.maximum(h1 + b1, 0.0).astype(jnp.bfloat16)

        h2 = jnp.dot(w2, h1, preferred_element_type=jnp.float32)
        h2 = jnp.maximum(h2 + b2, 0.0).astype(jnp.bfloat16)

        out_ref[:, lo:hi] = (jnp.dot(w3, h2, preferred_element_type=jnp.float32)
                             + b3)


def _fold_params(params):
    """Fold BN1 into (W2, b2) and BN2 into (W3, b3); cast weights to bf16.

    Raw params are PyTorch-layout: W (out, in), b (out,), BN vectors (64,).
    Exact in eval mode (BatchNorm is a pure per-feature affine on running stats).
    """
    (w1, b1, g1, be1, m1, v1,
     w2, b2, g2, be2, m2, v2,
     w3, b3) = params

    s1 = g1 * jax.lax.rsqrt(v1 + EPS)
    w2_eff = w2 * s1[None, :]                    # scale input columns of (out, in)
    b2_eff = b2 + w2 @ (be1 - m1 * s1)

    s2 = g2 * jax.lax.rsqrt(v2 + EPS)
    w3_eff = w3 * s2[None, :]
    b3_eff = b3 + w3 @ (be2 - m2 * s2)

    return (w1.astype(jnp.bfloat16),      b1.reshape(64, 1).astype(jnp.float32),
            w2_eff.astype(jnp.bfloat16),  b2_eff.reshape(64, 1).astype(jnp.float32),
            w3_eff.astype(jnp.bfloat16),  b3_eff.reshape(1, 1).astype(jnp.float32))


def _round_up(v, m):
    return ((v + m - 1) // m) * m


def _pick_batch_tile(b, cap):
    """Batch tile: multiple of 128, <= cap, and >= 2 (roughly even) grid steps for
    medium/large batches so the "parallel" axis uses both v7x TensorCores."""
    if b <= 256:                                   # tiny batch: one small tile
        return _round_up(max(b, 1), 128)
    n = max(2, pl.cdiv(b, cap))
    return _round_up(pl.cdiv(b, n), 128)


def binary_classification_forward(x, params, *, tb_cap=16384):
    """x: (B, 11) float32. Returns (B, 1) float32 logits (eval-mode forward)."""
    assert x.ndim == 2 and x.shape[1] == 11, x.shape
    w1f, b1c, w2f, b2c, w3f, b3c = _fold_params(params)

    B = x.shape[0]
    tb = _pick_batch_tile(B, tb_cap)
    n_tiles = pl.cdiv(B, tb)
    b_pad = n_tiles * tb

    x = x.astype(jnp.float32)
    if b_pad != B:
        # Only the ragged tail (if any) is padded; padded rows produce garbage
        # logits in their own lanes only and are sliced off below.
        x = jnp.pad(x, ((0, b_pad - B), (0, 0)))

    # VMEM budget: x block is lane-padded (11 -> 128) -> tb*512 B, double-buffered;
    # out block (1, tb) f32 -> tb*32 B, double-buffered; weights + per-chunk
    # intermediates are small -> generous fixed margin.  Raising the limit matters
    # on v5e (16 MiB default scoped VMEM); stays well under v7x's 64 MiB physical.
    vmem_limit = int(max(32 << 20, 2 * tb * 512 + 2 * tb * 32 + (8 << 20)))

    flops = 2 * b_pad * (11 * 64 + 64 * 64 + 64 * 1)
    bytes_accessed = (b_pad * (11 * 4 + 4)                    # x read + logits write
                      + 2 * (64 * 11 + 64 * 64 + 64)          # bf16 weights
                      + 4 * (64 + 64 + 1))                    # f32 biases

    out_t = pl.pallas_call(
        _mlp_kernel,
        out_shape=jax.ShapeDtypeStruct((1, b_pad), jnp.float32),
        grid=(n_tiles,),
        in_specs=[
            pl.BlockSpec((tb, 11), lambda i: (i, 0)),          # x tile: pipelined
            pl.BlockSpec((64, 11), lambda i: (0, 0)),          # weights: resident
            pl.BlockSpec((64, 1), lambda i: (0, 0)),
            pl.BlockSpec((64, 64), lambda i: (0, 0)),
            pl.BlockSpec((64, 1), lambda i: (0, 0)),
            pl.BlockSpec((1, 64), lambda i: (0, 0)),
            pl.BlockSpec((1, 1), lambda i: (0, 0)),
        ],
        out_specs=pl.BlockSpec((1, tb), lambda i: (0, i)),     # lane-dense output
        compiler_params=pltpu.CompilerParams(
            dimension_semantics=("parallel",),
            vmem_limit_bytes=vmem_limit),
        cost_estimate=pl.CostEstimate(
            flops=flops, transcendentals=0, bytes_accessed=bytes_accessed),
    )(x, w1f, b1c, w2f, b2c, w3f, b3c)

    return out_t.reshape(b_pad, 1)[:B]


def init_params(key):
    """Deterministic PyTorch-style init. Linear weights kept (out, in)."""
    ks = jax.random.split(key, 10)

    def linear(kw, kb, fan_in, fan_out):
        bound = 1.0 / jnp.sqrt(float(fan_in))
        w = jax.random.uniform(kw, (fan_out, fan_in), jnp.float32, -bound, bound)
        b = jax.random.uniform(kb, (fan_out,), jnp.float32, -bound, bound)
        return w, b

    w1, b1 = linear(ks[0], ks[1], 11, 64)
    w2, b2 = linear(ks[2], ks[3], 64, 64)
    w3, b3 = linear(ks[4], ks[5], 64, 1)

    # BatchNorm1d(64): gamma=1, beta=0 (PyTorch default); running stats made
    # non-trivial deterministically so the BN folding is actually exercised.
    g1 = jnp.ones((64,), jnp.float32)
    be1 = jnp.zeros((64,), jnp.float32)
    m1 = 0.1 * jax.random.normal(ks[6], (64,), jnp.float32)
    v1 = 1.0 + 0.1 * jax.random.uniform(ks[7], (64,), jnp.float32)

    g2 = jnp.ones((64,), jnp.float32)
    be2 = jnp.zeros((64,), jnp.float32)
    m2 = 0.1 * jax.random.normal(ks[8], (64,), jnp.float32)
    v2 = 1.0 + 0.1 * jax.random.uniform(ks[9], (64,), jnp.float32)

    return (w1, b1, g1, be1, m1, v1,
            w2, b2, g2, be2, m2, v2,
            w3, b3)


def reference_forward(x, params):
    """Full-precision eval-mode reference matching the PyTorch module."""
    (w1, b1, g1, be1, m1, v1,
     w2, b2, g2, be2, m2, v2,
     w3, b3) = params
    h = jnp.maximum(x @ w1.T + b1, 0.0)
    h = (h - m1) / jnp.sqrt(v1 + EPS) * g1 + be1
    h = jnp.maximum(h @ w2.T + b2, 0.0)
    h = (h - m2) / jnp.sqrt(v2 + EPS) * g2 + be2
    return h @ w3.T + b3                                       # (B, 1)


if __name__ == "__main__":
    key = jax.random.PRNGKey(0)
    kx, kp = jax.random.split(key)
    B = 16
    x = jax.random.normal(kx, (B, 11), jnp.float32)
    params = init_params(kp)

    out = binary_classification_forward(x, params)
    out = jax.block_until_ready(out)

    ref = reference_forward(x, params)
    assert out.shape == (B, 1)
    # bf16 weights/activations in the kernel vs f32 reference -> loose tolerance.
    assert jnp.allclose(out, ref, atol=2e-2, rtol=2e-2), (
        f"max abs diff {jnp.max(jnp.abs(out - ref))}")
    print("KERNEL_OK")
</pallas_src>

<mosaic_0001>
module attributes {stable_mosaic.version = 11 : i64} {
  func.func @_mlp_kernel(%arg0: i32, %arg1: memref<128x11xf32, #tpu.memory_space<vmem>>, %arg2: memref<64x11xbf16, #tpu.memory_space<vmem>>, %arg3: memref<64x1xf32, #tpu.memory_space<vmem>>, %arg4: memref<64x64xbf16, #tpu.memory_space<vmem>>, %arg5: memref<64x1xf32, #tpu.memory_space<vmem>>, %arg6: memref<1x64xbf16, #tpu.memory_space<vmem>>, %arg7: memref<1x1xf32, #tpu.memory_space<vmem>>, %arg8: memref<1x128xf32, #tpu.memory_space<vmem>>) attributes {dimension_semantics = [#tpu.dimension_semantics<parallel>], iteration_bounds = array<i64: 1>, scalar_prefetch = 0 : i64, scratch_operands = 0 : i64, tpu.core_type = #tpu.core_type<tc>, window_params = [{transform_indices = @transform_0, window_bounds = array<i64: 128, 11>}, {pipeline_mode = #tpu.pipeline_mode<synchronous>, transform_indices = @transform_1, window_bounds = array<i64: 64, 11>}, {pipeline_mode = #tpu.pipeline_mode<synchronous>, transform_indices = @transform_2, window_bounds = array<i64: 64, 1>}, {pipeline_mode = #tpu.pipeline_mode<synchronous>, transform_indices = @transform_3, window_bounds = array<i64: 64, 64>}, {pipeline_mode = #tpu.pipeline_mode<synchronous>, transform_indices = @transform_4, window_bounds = array<i64: 64, 1>}, {pipeline_mode = #tpu.pipeline_mode<synchronous>, transform_indices = @transform_5, window_bounds = array<i64: 1, 64>}, {pipeline_mode = #tpu.pipeline_mode<synchronous>, transform_indices = @transform_6, window_bounds = array<i64: 1, 1>}, {transform_indices = @transform_7, window_bounds = array<i64: 1, 128>}]} {
    %c0 = arith.constant 0 : index
    %c0_0 = arith.constant 0 : index
    %0 = vector.load %arg2[%c0, %c0_0] : memref<64x11xbf16, #tpu.memory_space<vmem>>, vector<64x11xbf16>
    %c0_1 = arith.constant 0 : index
    %c0_2 = arith.constant 0 : index
    %1 = vector.load %arg3[%c0_1, %c0_2] : memref<64x1xf32, #tpu.memory_space<vmem>>, vector<64x1xf32>
    %c0_3 = arith.constant 0 : index
    %c0_4 = arith.constant 0 : index
    %2 = vector.load %arg4[%c0_3, %c0_4] : memref<64x64xbf16, #tpu.memory_space<vmem>>, vector<64x64xbf16>
    %c0_5 = arith.constant 0 : index
    %c0_6 = arith.constant 0 : index
    %3 = vector.load %arg5[%c0_5, %c0_6] : memref<64x1xf32, #tpu.memory_space<vmem>>, vector<64x1xf32>
    %c0_7 = arith.constant 0 : index
    %c0_8 = arith.constant 0 : index
    %4 = vector.load %arg6[%c0_7, %c0_8] : memref<1x64xbf16, #tpu.memory_space<vmem>>, vector<1x64xbf16>
    %c0_9 = arith.constant 0 : index
    %c0_10 = arith.constant 0 : index
    %5 = vector.load %arg7[%c0_9, %c0_10] : memref<1x1xf32, #tpu.memory_space<vmem>>, vector<1x1xf32>
    %c0_11 = arith.constant 0 : index
    %c0_12 = arith.constant 0 : index
    %6 = vector.load %arg1[%c0_11, %c0_12] : memref<128x11xf32, #tpu.memory_space<vmem>>, vector<128x11xf32>
    %7 = arith.truncf %6 : vector<128x11xf32> to vector<128x11xbf16>
    %cst = arith.constant dense<0.000000e+00> : vector<64x128xf32>
    %8 = tpu.matmul %0, %7, %cst {dimension_numbers = #tpu.dot_dimension_numbers<[1], [1], [0], [0], [0, 0, 1, 0], [], []>} : vector<64x11xbf16>, vector<128x11xbf16>, vector<64x128xf32> -> vector<64x128xf32>
    %9 = vector.broadcast %1 : vector<64x1xf32> to vector<64x128xf32>
    %10 = arith.addf %8, %9 : vector<64x128xf32>
    %cst_13 = arith.constant 0.000000e+00 : f32
    %11 = vector.broadcast %cst_13 : f32 to vector<64x128xf32>
    %12 = arith.maximumf %10, %11 : vector<64x128xf32>
    %13 = arith.truncf %12 : vector<64x128xf32> to vector<64x128xbf16>
    %cst_14 = arith.constant dense<0.000000e+00> : vector<64x128xf32>
    %14 = tpu.matmul %2, %13, %cst_14 {dimension_numbers = #tpu.dot_dimension_numbers<[1], [0], [0], [1], [0, 0, 1, 1], [], []>} : vector<64x64xbf16>, vector<64x128xbf16>, vector<64x128xf32> -> vector<64x128xf32>
    %15 = vector.broadcast %3 : vector<64x1xf32> to vector<64x128xf32>
    %16 = arith.addf %14, %15 : vector<64x128xf32>
    %cst_15 = arith.constant 0.000000e+00 : f32
    %17 = vector.broadcast %cst_15 : f32 to vector<64x128xf32>
    %18 = arith.maximumf %16, %17 : vector<64x128xf32>
    %19 = arith.truncf %18 : vector<64x128xf32> to vector<64x128xbf16>
    %cst_16 = arith.constant dense<0.000000e+00> : vector<1x128xf32>
    %20 = tpu.matmul %4, %19, %cst_16 {dimension_numbers = #tpu.dot_dimension_numbers<[1], [0], [0], [1], [0, 0, 1, 1], [], []>} : vector<1x64xbf16>, vector<64x128xbf16>, vector<1x128xf32> -> vector<1x128xf32>
    %21 = vector.broadcast %5 : vector<1x1xf32> to vector<1x128xf32>
    %22 = arith.addf %20, %21 : vector<1x128xf32>
    %c0_17 = arith.constant 0 : index
    %c0_18 = arith.constant 0 : index
    %23 = vector.load %arg8[%c0_17, %c0_18] : memref<1x128xf32, #tpu.memory_space<vmem>>, vector<1x128xf32>
    tpu.vector_store %arg8[%c0_17, %c0_18], %22 {strides = array<i32>} : memref<1x128xf32, #tpu.memory_space<vmem>>, vector<1x128xf32>,
    return
  }
  func.func @transform_0(%arg0: i32) -> (i32, i32) {
    %c0_i32 = arith.constant 0 : i32
    %c0_i32_0 = arith.constant 0 : i32
    return %arg0, %c0_i32 : i32, i32
  }
  func.func @transform_1(%arg0: i32) -> (i32, i32) {
    %c0_i32 = arith.constant 0 : i32
    %c0_i32_0 = arith.constant 0 : i32
    %c0_i32_1 = arith.constant 0 : i32
    return %c0_i32, %c0_i32_0 : i32, i32
  }
  func.func @transform_2(%arg0: i32) -> (i32, i32) {
    %c0_i32 = arith.constant 0 : i32
    %c0_i32_0 = arith.constant 0 : i32
    %c0_i32_1 = arith.constant 0 : i32
    return %c0_i32, %c0_i32_0 : i32, i32
  }
  func.func @transform_3(%arg0: i32) -> (i32, i32) {
    %c0_i32 = arith.constant 0 : i32
    %c0_i32_0 = arith.constant 0 : i32
    %c0_i32_1 = arith.constant 0 : i32
    return %c0_i32, %c0_i32_0 : i32, i32
  }
  func.func @transform_4(%arg0: i32) -> (i32, i32) {
    %c0_i32 = arith.constant 0 : i32
    %c0_i32_0 = arith.constant 0 : i32
    %c0_i32_1 = arith.constant 0 : i32
    return %c0_i32, %c0_i32_0 : i32, i32
  }
  func.func @transform_5(%arg0: i32) -> (i32, i32) {
    %c0_i32 = arith.constant 0 : i32
    %c0_i32_0 = arith.constant 0 : i32
    %c0_i32_1 = arith.constant 0 : i32
    return %c0_i32, %c0_i32_0 : i32, i32
  }
  func.func @transform_6(%arg0: i32) -> (i32, i32) {
    %c0_i32 = arith.constant 0 : i32
    %c0_i32_0 = arith.constant 0 : i32
    %c0_i32_1 = arith.constant 0 : i32
    return %c0_i32, %c0_i32_0 : i32, i32
  }
  func.func @transform_7(%arg0: i32) -> (i32, i32) {
    %c0_i32 = arith.constant 0 : i32
    %c0_i32_0 = arith.constant 0 : i32
    return %c0_i32, %arg0 : i32, i32
  }
}

</mosaic_0001>

<bundles_post_ra>
// kernel: tpu_custom_call.1
= control target key start
LH: loop header
LB: loop body
LE: loop exit
PB: predicated region body
PF: predicated region fallthrough
CT: control target
= control target key end

     0   :  { %s826_s0 = inlined_call_operand.vmem [shape: f32[128,11], index: 0, kind: input, shape index: {}]   ;;  %s827_s1 = inlined_call_operand.vmem [shape: bf16[64,11], index: 1, kind: input, shape index: {}]   ;;  %s828_s2 = inlined_call_operand.vmem [shape: f32[64,1], index: 2, kind: input, shape index: {}]   ;;  %s829_s3 = inlined_call_operand.vmem [shape: bf16[64,64], index: 3, kind: input, shape index: {}]   ;;  %s830_s4 = inlined_call_operand.vmem [shape: f32[64,1], index: 4, kind: input, shape index: {}]   ;;  %s831_s5 = inlined_call_operand.vmem [shape: bf16[1,64], index: 5, kind: input, shape index: {}]   ;;  %s832_s6 = inlined_call_operand.<no memory space> [shape: f32[1,1], index: 6, kind: input, shape index: {}]   ;;  %s833_s7 = inlined_call_operand.hbm [shape: f32[1,128], index: 7, kind: output, shape index: {}]  }
   0x1   :  { %v12_v0 = vstv %s832_s6 }
   0x2   :  { %13 = vst [vmem:[#allocation2] sm:$0x1] %v12_v0 }
   0x3   :  { %v64_v1 = vld [vmem:[%s826_s0] sm:$0xff]  ;;  %v65_v2 = vld [vmem:[%s826_s0 + $0x8] sm:$0xff]  ;;  %vm148_vm0 = vcmask 89088   ;;  %v66_v3 = vld [vmem:[%s826_s0 + $0x10] sm:$0xff]  ;;  %v619_v6 = vmov 0  }
   0x4   :  { %v80_v4 = vpack.c.bf16 %v65_v2, %v64_v1  ;;  %v67_v5 = vld [vmem:[%s826_s0 + $0x18] sm:$0xff]  ;;  %585 = vset.pattern.permute.xlu0 %v619_v6  ;;  %586 = vset.pattern.permute.xlu1 %v619_v6  ;;  %v68_v9 = vld [vmem:[%s826_s0 + $0x20] sm:$0xff]  ;;  %v69_v10 = vld [vmem:[%s826_s0 + $0x28] sm:$0xff] }
   0x5   :  { %v81_v7 = vpack.c.bf16 %v67_v5, %v66_v3  ;;  %v587_v11 = vld [vmem:[%s827_s1] sm:$0xff]   ;;  %v82_v13 = vpack.c.bf16 %v69_v10, %v68_v9  ;;  %v40_v15 = vld [vmem:[%s828_s2 + $0x10] sm:$0xff]  ;;  %v39_v16 = vld [vmem:[%s828_s2 + $0x8] sm:$0xff] }
   0x6   :  { %573 = vmatprep.subr.msk.bf16.mxu0 %vm148_vm0, %v80_v4  ;;  %v162_v8 = vsel %vm148_vm0, %v80_v4, 0  ;;  %537 = vmatprep.mubr.msk.bf16.mxu0 %vm148_vm0, %v587_v11  ;;  %v38_v14 = vld [vmem:[%s828_s2] sm:$0xff]  ;;  %v41_v17 = vld [vmem:[%s828_s2 + $0x18] sm:$0xff]  ;;  %v70_v18 = vld [vmem:[%s826_s0 + $0x30] sm:$0xff] }
   0x7   :  { %522 = vmatpush3.bf16.xpose.msra.mxu0 %v162_v8  ;;  %v165_v12 = vsel %vm148_vm0, %v81_v7, 0  ;;  %90 = vperm.xlu0 %585, %v38_v14   ;;  %v168_v19 = vsel %vm148_vm0, %v82_v13, 0  ;;  %v71_v20 = vld [vmem:[%s826_s0 + $0x38] sm:$0xff]  ;;  %v42_v21 = vld [vmem:[%s828_s2 + $0x20] sm:$0xff]  ;;  %v43_v22 = vld [vmem:[%s828_s2 + $0x28] sm:$0xff] }
   0x8   :  { %574 = vmatprep.subr.msk.bf16.mxu0 %vm148_vm0, %v81_v7  ;;  %100 = vperm.xlu1 %586, %v40_v15   ;;  %v83_v23 = vpack.c.bf16 %v71_v20, %v70_v18 }
   0xb   :  { %95 = vperm.xlu0 %585, %v39_v16  }
   0xc   :  { %105 = vperm.xlu1 %586, %v41_v17  }
   0xf   :  { %524 = vmatpush3.bf16.xpose.msra.mxu0 %v165_v12 }
  0x10   :  { %575 = vmatprep.subr.msk.bf16.mxu0 %vm148_vm0, %v82_v13 }
  0x11   :  { %14 = vsyncpa [#allocation4], 0  ;;  %110 = vperm.xlu0 %585, %v42_v21   ;;  %v44_v24 = vld [vmem:[%s828_s2 + $0x30] sm:$0xff]  ;;  %115 = vperm.xlu1 %586, %v43_v22   ;;  %v45_v25 = vld [vmem:[%s828_s2 + $0x38] sm:$0xff]  ;;  %v171_v30 = vsel %vm148_vm0, %v83_v23, 0  ;;  %vm322_vm1 = vcmask 523264  }
  0x12   :  { %v72_v26 = vld [vmem:[%s826_s0 + $0x40] sm:$0xff]  ;;  %v73_v27 = vld [vmem:[%s826_s0 + $0x48] sm:$0xff]  ;;  %v56_v32 = vld [vmem:[%s830_s4 + $0x10] sm:$0xff]  ;;  %vm621_vm2 = vmmov 0   ;;  %s622_s30 = smov [#allocation3]  }
  0x13   :  { %v54_v28 = vld [vmem:[%s830_s4] sm:$0xff]  ;;  %v55_v29 = vld [vmem:[%s830_s4 + $0x8] sm:$0xff]  ;;  %v84_v31 = vpack.c.bf16 %v73_v27, %v72_v26  ;;  %v57_v33 = vld [vmem:[%s830_s4 + $0x18] sm:$0xff]  ;;  %s471_s8 = sshll.u32 %s622_s30, 4  ;;  %s472_s8 = int_to_ptr.vmem [resolvable:$true] %s471_s8 }
  0x14   :  { %v74_v34 = vld [vmem:[%s826_s0 + $0x50] sm:$0xff]  ;;  %v75_v35 = vld [vmem:[%s826_s0 + $0x58] sm:$0xff]  ;;  %v58_v36 = vld [vmem:[%s830_s4 + $0x20] sm:$0xff]  ;;  %s595_s9 = scalar_lea.vmem %s472_s8, 16  ;;  %s599_s10 = scalar_lea.vmem %s472_s8, 32 }
  0x15   :  { %120 = vperm.xlu0 %585, %v44_v24   ;;  %125 = vperm.xlu1 %586, %v45_v25   ;;  %v59_v37 = vld [vmem:[%s830_s4 + $0x28] sm:$0xff]  ;;  %v174_v38 = vsel %vm148_vm0, %v84_v31, 0  ;;  %v85_v39 = vpack.c.bf16 %v75_v35, %v74_v34  ;;  %v60_v40 = vld [vmem:[%s830_s4 + $0x30] sm:$0xff]  ;;  %v61_v41 = vld [vmem:[%s830_s4 + $0x38] sm:$0xff]  ;;  %p596_p0 = scmp.ne.s32.totalorder %s472_s8, %s595_s9  ;;  %p600_p1 = scmp.lt.s32.totalorder %s472_s8, %s472_s8 }
  0x16   :  { %v76_v42 = vld [vmem:[%s826_s0 + $0x60] sm:$0xff]  ;;  %v77_v43 = vld [vmem:[%s826_s0 + $0x68] sm:$0xff]  ;;  %v78_v47 = vld [vmem:[%s826_s0 + $0x70] sm:$0xff]  ;;  %p601_p2 = scmp.lt.s32.totalorder %s599_s10, %s595_s9 }
  0x17   :  { %526 = vmatpush3.bf16.xpose.msra.mxu0 %v168_v19  ;;  %v63_v44 = vld [vmem:[#allocation2] sm:$0x1]  ;;  %v177_v45 = vsel %vm148_vm0, %v85_v39, 0  ;;  %v86_v46 = vpack.c.bf16 %v77_v43, %v76_v42  ;;  %v79_v48 = vld [vmem:[%s826_s0 + $0x78] sm:$0xff]  ;;  %v588_v52 = vld [vmem:[%s827_s1 + $0x8] sm:$0xff]  }
  0x18   :  { %576 = vmatprep.subr.msk.bf16.mxu0 %vm148_vm0, %v83_v23  ;;  %v87_v50 = vpack.c.bf16 %v79_v48, %v78_v47  ;;  %v589_v53 = vld [vmem:[%s827_s1 + $0x10] sm:$0xff]   ;;  %v590_v54 = vld [vmem:[%s827_s1 + $0x18] sm:$0xff]   ;;  %v591_v55 = vld [vmem:[%s829_s3] sm:$0xff]   ;;  %p602_p3 = por %p601_p2, %p600_p1 }
  0x19   :  { %264 = vperm.xlu0 %585, %v54_v28   ;;  %269 = vperm.xlu1 %586, %v55_v29   ;;  %v180_v49 = vsel %vm148_vm0, %v86_v46, 0  ;;  %v592_v28 = vld [vmem:[%s829_s3 + $0x8] sm:$0xff]   ;;  %v593_v29 = vld [vmem:[%s829_s3 + $0x10] sm:$0xff]  }
  0x1a   :  { %v183_v51 = vsel %vm148_vm0, %v87_v50, 0  ;;  %553 = vmatprep.mubr.msk.bf16.mxu1 %vm322_vm1, %v591_v55  ;;  %p603_p4 = pnand %p602_p3, %p596_p0 }
  0x1d   :  { %274 = vperm.xlu0 %585, %v56_v32   ;;  %279 = vperm.xlu1 %586, %v57_v33  }
  0x1f   :  { %528 = vmatpush3.bf16.xpose.msra.mxu0 %v171_v30  ;;  %v594_v30 = vld [vmem:[%s829_s3 + $0x18] sm:$0xff]  }
  0x20   :  { %577 = vmatprep.subr.msk.bf16.mxu0 %vm148_vm0, %v84_v31  ;;  %v620_v31 = vmov 0.0  }
  0x21   :  { %284 = vperm.xlu0 %585, %v58_v36   ;;  %289 = vperm.xlu1 %586, %v59_v37  }
  0x25   :  { %294 = vperm.xlu0 %585, %v60_v40   ;;  %299 = vperm.xlu1 %586, %v61_v41  }
  0x27   :  { %530 = vmatpush3.bf16.xpose.msra.mxu0 %v174_v38 }
  0x28   :  { %578 = vmatprep.subr.msk.bf16.mxu0 %vm148_vm0, %v85_v39 }
  0x29   :  { %414 = vperm.xlu0 %585, %v63_v44  }
  0x2f   :  { %532 = vmatpush3.bf16.xpose.msra.mxu0 %v177_v45 }
  0x30   :  { %579 = vmatprep.subr.msk.bf16.mxu0 %vm148_vm0, %v86_v46 }
  0x37   :  { %534 = vmatpush3.bf16.xpose.msra.mxu0 %v180_v49 }
  0x38   :  { %580 = vmatprep.subr.msk.bf16.mxu0 %vm148_vm0, %v87_v50 }
  0x3f   :  { %536 = vmatpush3.bf16.xpose.msra.mxu0 %v183_v51 }
  0x46   :  { %538 = vmatmul.mubr.msk.bf16.vlgmr.msra.gmra.mrb[0].mxu0 %vm148_vm0, %v588_v52 }
  0x47   :  { %541 = vmatprep.mubr.msk.bf16.mxu0 %vm148_vm0, %v589_v53 }
  0x4e   :  { %542 = vmatmul.mubr.msk.bf16.gmra.mrb[4].mxu0 %vm148_vm0, %v590_v54 }
  0x86   :  { %v91_v56 = vpop.permute.xlu0 %90 }
  0x87   :  { %v101_v57 = vpop.permute.xlu1 %100 }
  0x8a   :  { %v96_v58 = vpop.permute.xlu0 %95 }
  0x8b   :  { %v106_v59 = vpop.permute.xlu1 %105 }
  0x90   :  { %v111_v63 = vpop.permute.xlu0 %110  ;;  %v116_v4 = vpop.permute.xlu1 %115 }
  0x94   :  { %v121_v11 = vpop.permute.xlu0 %120  ;;  %v126_v16 = vpop.permute.xlu1 %125 }
  0x98   :  { %v265_v32 = vpop.permute.xlu0 %264  ;;  %v270_v33 = vpop.permute.xlu1 %269 }
  0x9c   :  { %v275_v34 = vpop.permute.xlu0 %274  ;;  %v280_v35 = vpop.permute.xlu1 %279 }
  0xa0   :  { %v285_v39 = vpop.permute.xlu0 %284  ;;  %v290_v44 = vpop.permute.xlu1 %289 }
  0xa4   :  { %v295_v51 = vpop.permute.xlu0 %294 }
 0x119   :  { %v539_v60 = vpop.f32.mrb[0].mxu0 }
 0x11a   :  { %v228_v61 = vadd.f32 %v539_v60, %v101_v57  ;;  %v219_v62 = vpop.f32.mrb[1].mxu0 }
 0x11b   :  { %v220_v0 = vadd.f32 %v219_v62, %v91_v56  ;;  %v540_v1 = vpop.f32.mrb[2].mxu0  ;;  %v300_v56 = vpop.permute.xlu1 %299 }
 0x11c   :  { %v231_v2 = vadd.f32 %v540_v1, %v106_v59  ;;  %v222_v3 = vpop.f32.mrb[3].mxu0  ;;  %v252_v6 = vmax.f32 %v228_v61, 0.0 }
 0x11d   :  { %v223_v5 = vadd.f32 %v222_v3, %v96_v58  ;;  %v250_v8 = vmax.f32 %v220_v0, 0.0 }
 0x11e   :  { %v253_v7 = vmax.f32 %v231_v2, 0.0 }
 0x11f   :  { %v251_v9 = vmax.f32 %v223_v5, 0.0  ;;  %v417_v5 = vlaneseq }
 0x120   :  { %v259_v10 = vpack.c.bf16 %v253_v7, %v252_v6 }
 0x121   :  { %v543_v12 = vpop.f32.mrb[4].mxu0  ;;  %v258_v13 = vpack.c.bf16 %v251_v9, %v250_v8  ;;  %v418_v6 = vshrl.u32 %v417_v5, 7  ;;  %v415_v8 = vpop.permute.xlu0 %414 }
 0x122   :  { %v244_v14 = vadd.f32 %v543_v12, %v121_v11  ;;  %v235_v15 = vpop.f32.mrb[5].mxu0 }
 0x123   :  { %v236_v17 = vadd.f32 %v235_v15, %v111_v63  ;;  %v544_v18 = vpop.f32.mrb[6].mxu0  ;;  %545 = vmatprep.subr.bf16.mxu1 %v258_v13  ;;  %v419_v7 = vsub.s32 0, %v418_v6 }
 0x124   :  { %v247_v19 = vadd.f32 %v544_v18, %v126_v16  ;;  %v238_v20 = vpop.f32.mrb[7].mxu0  ;;  %546 = vmatpush3.bf16.msra.mxu1 %v258_v13  ;;  %v256_v22 = vmax.f32 %v244_v14, 0.0 }
 0x125   :  { %v239_v21 = vadd.f32 %v238_v20, %v116_v4  ;;  %547 = vmatprep.subr.bf16.mxu1 %v259_v10  ;;  %v254_v24 = vmax.f32 %v236_v17, 0.0  ;;  %v62_v4 = vld [vmem:[%s831_s5] sm:$0x1]  ;;  %v420_v9 = vrot.slane %v415_v8, %v419_v7 }
 0x126   :  { %v257_v23 = vmax.f32 %v247_v19, 0.0 }
 0x127   :  { %v255_v25 = vmax.f32 %v239_v21, 0.0 }
 0x128   :  { %v261_v26 = vpack.c.bf16 %v257_v23, %v256_v22  ;;  %548 = vmatpush3.bf16.msra.mxu1 %v259_v10 }
 0x129   :  { %v260_v27 = vpack.c.bf16 %v255_v25, %v254_v24 }
 0x12b   :  { %549 = vmatprep.subr.bf16.mxu1 %v260_v27 }
 0x12c   :  { %550 = vmatpush3.bf16.msra.mxu1 %v260_v27 }
 0x12d   :  { %551 = vmatprep.subr.bf16.mxu1 %v261_v26 }
 0x130   :  { %552 = vmatpush3.bf16.msra.mxu1 %v261_v26 }
 0x131   :  { %561 = vmatprep.subr.bf16.mxu1 %v620_v31 }
 0x133   :  { %554 = vmatmul.mubr.msk.bf16.vlgmr.msra.gmra.mrb[0].mxu1 %vm322_vm1, %v592_v28 }
 0x134   :  { %557 = vmatprep.mubr.msk.bf16.mxu1 %vm322_vm1, %v593_v29 }
 0x13b   :  { %558 = vmatmul.mubr.msk.bf16.gmra.mrb[4].mxu1 %vm322_vm1, %v594_v30 }
 0x13c   :  { %569 = vmatprep.mubr.msk.bf16.mxu1 %vm621_vm2, %v620_v31 }
 0x206   :  { %v555_v36 = vpop.f32.mrb[0].mxu1 }
 0x207   :  { %v378_v37 = vadd.f32 %v555_v36, %v275_v34  ;;  %v369_v38 = vpop.f32.mrb[1].mxu1 }
 0x208   :  { %v370_v40 = vadd.f32 %v369_v38, %v265_v32  ;;  %v556_v41 = vpop.f32.mrb[2].mxu1 }
 0x209   :  { %v381_v42 = vadd.f32 %v556_v41, %v280_v35  ;;  %v372_v43 = vpop.f32.mrb[3].mxu1  ;;  %v402_v46 = vmax.f32 %v378_v37, 0.0 }
 0x20a   :  { %v373_v45 = vadd.f32 %v372_v43, %v270_v33  ;;  %v400_v48 = vmax.f32 %v370_v40, 0.0 }
 0x20b   :  { %v403_v47 = vmax.f32 %v381_v42, 0.0 }
 0x20c   :  { %v401_v49 = vmax.f32 %v373_v45, 0.0 }
 0x20d   :  { %v409_v50 = vpack.c.bf16 %v403_v47, %v402_v46 }
 0x20e   :  { %v408_v52 = vpack.c.bf16 %v401_v49, %v400_v48  ;;  %v559_v53 = vpop.f32.mrb[4].mxu1 }
 0x20f   :  { %v394_v54 = vadd.f32 %v559_v53, %v295_v51  ;;  %v385_v55 = vpop.f32.mrb[5].mxu1 }
 0x210   :  { %v386_v57 = vadd.f32 %v385_v55, %v285_v39  ;;  %v560_v58 = vpop.f32.mrb[6].mxu1  ;;  %562 = vmatpush3.bf16.msra.mxu1 %v408_v52 }
 0x211   :  { %v397_v59 = vadd.f32 %v560_v58, %v300_v56  ;;  %v388_v60 = vpop.f32.mrb[7].mxu1  ;;  %563 = vmatprep.subr.bf16.mxu1 %v620_v31  ;;  %v406_v62 = vmax.f32 %v394_v54, 0.0 }
 0x212   :  { %v389_v61 = vadd.f32 %v388_v60, %v290_v44  ;;  %v404_v0 = vmax.f32 %v386_v57, 0.0 }
 0x213   :  { %v407_v63 = vmax.f32 %v397_v59, 0.0 }
 0x214   :  { %v405_v1 = vmax.f32 %v389_v61, 0.0  ;;  %564 = vmatpush3.bf16.msra.mxu1 %v409_v50 }
 0x215   :  { %v411_v2 = vpack.c.bf16 %v407_v63, %v406_v62  ;;  %565 = vmatprep.subr.bf16.mxu1 %v620_v31 }
 0x216   :  { %v410_v3 = vpack.c.bf16 %v405_v1, %v404_v0 }
 0x218   :  { %566 = vmatpush3.bf16.msra.mxu1 %v410_v3 }
 0x219   :  { %567 = vmatprep.subr.bf16.mxu1 %v620_v31 }
 0x21c   :  { %568 = vmatpush3.bf16.msra.mxu1 %v411_v2 }
 0x21f   :  { %570 = vmatmul.mubr.msk.bf16.vlgmr.msra.gmra.mrb[8].mxu1 %vm322_vm1, %v62_v4 }
 0x2f2   :  { %v458_v10 = vpop.f32.mrb[8].mxu1 }
 0x2f3   :  { %v459_v11 = vadd.f32 %v458_v10, %v420_v9  ;;  %v571_v12 = vpop.f32.mrb[9].mxu1 }
 0x2f4   :  { %v461_v13 = vpop.f32.mrb[10].mxu1 }
 0x2f5   :  { %464 = vst [vmem:[#allocation3] sm:$0x1] %v459_v11  ;;  %v572_v14 = vpop.f32.mrb[11].mxu1 }
 0x2f6   :  { %606 = shalt.err (!%p603_p4)
}
 0x2f7   :  { %s607_s11 = scalar_lea.hbm %s833_s7, 16 }
 0x2f8   :  { %p608_p5 = scmp.ne.s32.totalorder %s833_s7, %s607_s11  ;;  %p611_p6 = scmp.lt.u32.totalorder %s607_s11, %s833_s7 }
 0x2fa   :  { %p613_p7 = pnand %p611_p6, %p608_p5 }
 0x2fc   :  { %616 = shalt.err (!%p613_p7)
}
 0x2fd   :  { %474 = dma.vmem_to_hbm [thread:$0]  %s472_s8, 16, %s833_s7, [#allocation4]  }
 0x2fe   :  { %617 = dma.done.wait [#allocation4], 16  }
 0x2ff   :  { %618 = vsyncadd [#allocation4], 4294967280 }
 0x300   :  { %478 = vsyncpa [#allocation4], 1 }

</bundles_post_ra>
